<compile_context>
chip_gen: v6e
topology: v6e:2x2x1
jax: 0.10.0
libtpu: 0.0.40
codegen_flags: <defaults>
</compile_context>

<pallas_src>
import functools
import math

import jax
import jax.numpy as jnp
from jax import lax
from jax.experimental import pallas as pl
from jax.experimental.pallas import tpu as pltpu


def _round_up(v, m):
    return ((v + m - 1) // m) * m


# ----------------------------------------------------------------------------
# Stage 1: projection kernel — h = x @ W (bf16 out), f1 = h @ a1, f2^T.
# ----------------------------------------------------------------------------
def _proj_kernel(x_ref, w_ref, a1_ref, a2t_ref, h_ref, f1_ref, f2t_ref):
    h32 = jnp.dot(x_ref[...], w_ref[...], preferred_element_type=jnp.float32)
    h_ref[...] = h32.astype(h_ref.dtype)                       # bf16 values for Stage 2
    f1_ref[...] = jnp.dot(h32, a1_ref[...], preferred_element_type=jnp.float32)
    # (1, F) contracted with (tm1, F) on the feature dim -> (1, tm1); no transpose.
    f2t_ref[...] = lax.dot_general(
        a2t_ref[...], h32,
        dimension_numbers=(((1,), (1,)), ((), ())),
        preferred_element_type=jnp.float32)


# ----------------------------------------------------------------------------
# Stage 2: row x column tiled attention kernel with online softmax.
#   f1_ref : (TM, 1)          f32   row term for this row tile
#   f2t_ref: (1, TN)          f32   column term for this column tile
#   adj_ref: (TM, TN)         int8/f32 adjacency tile
#   h_ref  : (n_col, TN, F)   bf16  resident projected features (values)
#   out_ref: (TM, F)          f32
#   m/l/acc: VMEM scratch — running max, running sum, f32 accumulator
# ----------------------------------------------------------------------------
def _attn_kernel(f1_ref, f2t_ref, adj_ref, h_ref, out_ref,
                 m_ref, l_ref, acc_ref, *, alpha, concat, n_valid, tn, mask_cols):
    j = pl.program_id(1)

    @pl.when(j == 0)
    def _():
        m_ref[...] = jnp.full_like(m_ref, -jnp.inf)
        l_ref[...] = jnp.zeros_like(l_ref)
        acc_ref[...] = jnp.zeros_like(acc_ref)

    # e[i, k] = leakyrelu(h[i].a1 + h[k].a2); maximum() form valid for 0<alpha<1.
    e_pre = f1_ref[...] + f2t_ref[...]                          # (TM, TN) f32
    e = jnp.maximum(e_pre, alpha * e_pre)

    # attention = adj * e (matches the active PyTorch branch: unmasked softmax
    # over adj*e, NOT the commented-out where(adj>0, e, -9e15) variant).
    att = adj_ref[...].astype(jnp.float32) * e

    if mask_cols:  # ragged last column tile: exclude padded keys from the softmax
        col = j * tn + lax.broadcasted_iota(jnp.int32, att.shape, 1)
        att = jnp.where(col < n_valid, att, -jnp.inf)

    # Online softmax update (running max / sum, deferred normalization).
    m_prev = m_ref[...]
    m_new = jnp.maximum(m_prev, jnp.max(att, axis=-1, keepdims=True))
    corr = jnp.exp(m_prev - m_new)
    p = jnp.exp(att - m_new)                                    # f32 exp (precision)
    l_ref[...] = corr * l_ref[...] + jnp.sum(p, axis=-1, keepdims=True)
    # TODO(synk): F.dropout on the attention matrix — identity in eval mode, omitted.

    h_j = h_ref[j]                                              # (TN, F) bf16
    acc_ref[...] = corr * acc_ref[...] + jnp.dot(
        p.astype(jnp.bfloat16), h_j, preferred_element_type=jnp.float32)
    m_ref[...] = m_new

    @pl.when(j == pl.num_programs(1) - 1)
    def _():
        hp = acc_ref[...] * pl.reciprocal(l_ref[...], approx=True)   # EUP slot
        if concat:
            hp = jnp.where(hp > 0, hp, jnp.exp(hp) - 1.0)            # ELU
        out_ref[...] = hp.astype(out_ref.dtype)


def query_layer(x, adj, W, a, *, num_rel, alpha=0.2, concat=True,
                tile_rows=512, tile_cols=1024):
    """GAT QueryLayer forward.

    adj is streamed in whatever dtype it arrives in: pass a binary adjacency as
    int8 (cast ONCE by the caller, outside the per-call path) to quarter the
    dominant N^2 HBM stream; a weighted adjacency should be passed as float32.
    """
    N, in_f = x.shape
    out_f = W.shape[1]
    a1 = a[:out_f, :]                     # (F_out, 1)
    a2t = jnp.transpose(a[out_f:, :])     # (1, F_out)
    if adj.dtype == jnp.bool_:
        adj = adj.astype(jnp.int8)

    # ---- Tile geometry. ----
    tm = min(_round_up(tile_rows, 32), _round_up(N, 8))     # 32: int8 sublane packing
    tn = max(128, (tile_cols // 128) * 128)
    if N <= tn:
        tn, n_col, n_pad = N, 1, N                           # single column tile
    else:
        n_col = pl.cdiv(N, tn)
        n_pad = n_col * tn
    n_row = pl.cdiv(N, tm)
    mask_cols = n_pad > N          # ragged last column tile -> in-kernel key mask

    # Zero-pad x rows so padded h rows are exactly 0 (finite) under p == 0.
    x_p = x if n_pad == N else jnp.pad(x, ((0, n_pad - N), (0, 0)))

    # ---- Stage 1: row-tiled projection kernel. ----
    tm1 = n_pad if n_pad <= 1024 else 512
    h, f1, f2t = pl.pallas_call(
        _proj_kernel,
        out_shape=(
            jax.ShapeDtypeStruct((n_pad, out_f), jnp.bfloat16),   # h (bf16)
            jax.ShapeDtypeStruct((n_pad, 1), jnp.float32),        # f1
            jax.ShapeDtypeStruct((1, n_pad), jnp.float32),        # f2^T
        ),
        grid=(pl.cdiv(n_pad, tm1),),
        in_specs=[
            pl.BlockSpec((tm1, in_f), lambda i: (i, 0)),
            pl.BlockSpec((in_f, out_f), lambda i: (0, 0)),
            pl.BlockSpec((out_f, 1), lambda i: (0, 0)),
            pl.BlockSpec((1, out_f), lambda i: (0, 0)),
        ],
        out_specs=(
            pl.BlockSpec((tm1, out_f), lambda i: (i, 0)),
            pl.BlockSpec((tm1, 1), lambda i: (i, 0)),
            pl.BlockSpec((1, tm1), lambda i: (0, i)),
        ),
        compiler_params=pltpu.CompilerParams(
            dimension_semantics=("parallel",)),
    )(x_p, W, a1, a2t)

    # Resident values: (n_col, TN, F) so the kernel indexes column tiles along
    # the leading dim (well-supported dynamic first-axis index).
    h3 = h.reshape(n_col, tn, out_f)

    # ---- Stage 2 VMEM budget (per-TC; row axis "parallel" shards rows on v7x). ----
    adj_item = jnp.dtype(adj.dtype).itemsize
    vmem_est = (2 * tm * tn * adj_item          # adj tiles, double-buffered
                + 2 * tm * 4                    # f1 tiles
                + 2 * 8 * tn * 4                # f2t tiles (sublane-padded)
                + 2 * n_col * tn * out_f * 2    # resident bf16 h (default dbl-buffer)
                + 2 * tm * out_f * 4            # out tiles
                + tm * (out_f + 2) * 4          # acc / m / l scratch
                + 6 * tm * tn * 4)              # in-kernel f32 temporaries
    try:
        phys = pltpu.get_tpu_info().vmem_capacity_bytes
    except Exception:
        phys = 64 << 20                          # conservative default (v7x per-TC)
    cap = max(min(phys - (16 << 20), 100 << 20), 32 << 20)
    vmem_limit = int(min(max(vmem_est + (4 << 20), 32 << 20), cap))

    kernel = functools.partial(_attn_kernel, alpha=alpha, concat=concat,
                               n_valid=N, tn=tn, mask_cols=mask_cols)
    out2d = pl.pallas_call(
        kernel,
        out_shape=jax.ShapeDtypeStruct((N, out_f), jnp.float32),
        grid=(n_row, n_col),
        in_specs=[
            pl.BlockSpec((tm, 1), lambda i, j: (i, 0)),               # f1 row tile
            pl.BlockSpec((1, tn), lambda i, j: (0, j)),               # f2t col tile
            pl.BlockSpec((tm, tn), lambda i, j: (i, j)),              # adjacency tile
            pl.BlockSpec((n_col, tn, out_f), lambda i, j: (0, 0, 0)), # resident h
        ],
        out_specs=pl.BlockSpec((tm, out_f), lambda i, j: (i, 0)),
        scratch_shapes=[
            pltpu.VMEM((tm, 1), jnp.float32),       # running max
            pltpu.VMEM((tm, 1), jnp.float32),       # running sum
            pltpu.VMEM((tm, out_f), jnp.float32),   # f32 output accumulator
        ],
        compiler_params=pltpu.CompilerParams(
            dimension_semantics=("parallel", "arbitrary"),
            vmem_limit_bytes=vmem_limit),
    )(f1, f2t, adj, h3)

    # attention.repeat(num_rel,1).view(num_rel,N,N) tiles identical copies ->
    # per-relation outputs are identical; broadcast instead of recompute.
    return jnp.broadcast_to(out2d[None, :, :], (num_rel, N, out_f))


# ----------------------------------------------------------------------------
# Pure-JAX reference for a sanity check.
# ----------------------------------------------------------------------------
def _reference(x, adj, W, a, *, num_rel, alpha, concat):
    h = x @ W
    F = W.shape[1]
    e_pre = h @ a[:F] + (h @ a[F:]).T
    e = jnp.where(e_pre > 0, e_pre, alpha * e_pre)
    att = jax.nn.softmax(adj * e, axis=-1)
    hp = att @ h
    if concat:
        hp = jnp.where(hp > 0, hp, jnp.exp(hp) - 1.0)
    return jnp.broadcast_to(hp[None], (num_rel,) + hp.shape)


def _xavier_uniform(key, shape, gain):
    fan_in, fan_out = shape[0], shape[1]
    limit = gain * math.sqrt(6.0 / (fan_in + fan_out))
    return jax.random.uniform(key, shape, jnp.float32, -limit, limit)


if __name__ == "__main__":
    def run_case(key, N, num_rel, in_f, out_f, alpha, tile_rows, tile_cols):
        kx, kadj, kw, ka = jax.random.split(key, 4)
        x = jax.random.normal(kx, (N, in_f), jnp.float32)
        adj_f32 = (jax.random.uniform(kadj, (N, N)) > 0.5).astype(jnp.float32)
        adj_i8 = adj_f32.astype(jnp.int8)   # one-time cast, hoisted out of the call path
        W = _xavier_uniform(kw, (in_f, out_f), gain=1.414)
        a = _xavier_uniform(ka, (2 * out_f, 1), gain=1.414)

        out = query_layer(x, adj_i8, W, a, num_rel=num_rel, alpha=alpha,
                          concat=True, tile_rows=tile_rows, tile_cols=tile_cols)
        out = jax.block_until_ready(out)

        assert out.shape == (num_rel, N, out_f)
        assert out.dtype == jnp.float32
        assert bool(jnp.all(jnp.isfinite(out)))

        ref = _reference(x, adj_f32, W, a, num_rel=num_rel, alpha=alpha, concat=True)
        # bf16 p/h on the MXU + approx reciprocal: expect ~1e-2-level agreement.
        assert bool(jnp.allclose(out, ref, rtol=2e-2, atol=2e-2)), "mismatch vs reference"

    key = jax.random.PRNGKey(0)
    k1, k2 = jax.random.split(key)

    # Small case matching the module (batch == num_e, required by repeat/view):
    # single column tile, single row tile.
    run_case(k1, N=8, num_rel=3, in_f=32, out_f=16, alpha=0.2,
             tile_rows=256, tile_cols=1024)

    # Exercises the full 2-D grid: multiple row tiles (ragged last row tile)
    # and column chunking with online softmax + masked ragged final column tile.
    run_case(k2, N=200, num_rel=2, in_f=32, out_f=16, alpha=0.2,
             tile_rows=96, tile_cols=128)

    print("KERNEL_OK")
</pallas_src>

<mosaic_0001>
module attributes {stable_mosaic.version = 11 : i64} {
  func.func @_proj_kernel(%arg0: i32, %arg1: memref<8x32xf32, #tpu.memory_space<vmem>>, %arg2: memref<32x16xf32, #tpu.memory_space<vmem>>, %arg3: memref<16x1xf32, #tpu.memory_space<vmem>>, %arg4: memref<1x16xf32, #tpu.memory_space<vmem>>, %arg5: memref<8x16xbf16, #tpu.memory_space<vmem>>, %arg6: memref<8x1xf32, #tpu.memory_space<vmem>>, %arg7: memref<1x8xf32, #tpu.memory_space<vmem>>) attributes {dimension_semantics = [#tpu.dimension_semantics<parallel>], iteration_bounds = array<i64: 1>, scalar_prefetch = 0 : i64, scratch_operands = 0 : i64, tpu.core_type = #tpu.core_type<tc>, window_params = [{transform_indices = @transform_0, window_bounds = array<i64: 8, 32>}, {pipeline_mode = #tpu.pipeline_mode<synchronous>, transform_indices = @transform_1, window_bounds = array<i64: 32, 16>}, {pipeline_mode = #tpu.pipeline_mode<synchronous>, transform_indices = @transform_2, window_bounds = array<i64: 16, 1>}, {pipeline_mode = #tpu.pipeline_mode<synchronous>, transform_indices = @transform_3, window_bounds = array<i64: 1, 16>}, {transform_indices = @transform_4, window_bounds = array<i64: 8, 16>}, {transform_indices = @transform_5, window_bounds = array<i64: 8, 1>}, {transform_indices = @transform_6, window_bounds = array<i64: 1, 8>}]} {
    %c0 = arith.constant 0 : index
    %c0_0 = arith.constant 0 : index
    %0 = vector.load %arg1[%c0, %c0_0] : memref<8x32xf32, #tpu.memory_space<vmem>>, vector<8x32xf32>
    %c0_1 = arith.constant 0 : index
    %c0_2 = arith.constant 0 : index
    %1 = vector.load %arg2[%c0_1, %c0_2] : memref<32x16xf32, #tpu.memory_space<vmem>>, vector<32x16xf32>
    %cst = arith.constant dense<0.000000e+00> : vector<8x16xf32>
    %2 = tpu.matmul %0, %1, %cst {dimension_numbers = #tpu.dot_dimension_numbers<[1], [0], [0], [1], [0, 0, 1, 1], [], []>} : vector<8x32xf32>, vector<32x16xf32>, vector<8x16xf32> -> vector<8x16xf32>
    %3 = arith.truncf %2 : vector<8x16xf32> to vector<8x16xbf16>
    %c0_3 = arith.constant 0 : index
    %c0_4 = arith.constant 0 : index
    %4 = vector.load %arg5[%c0_3, %c0_4] : memref<8x16xbf16, #tpu.memory_space<vmem>>, vector<8x16xbf16>
    tpu.vector_store %arg5[%c0_3, %c0_4], %3 {strides = array<i32>} : memref<8x16xbf16, #tpu.memory_space<vmem>>, vector<8x16xbf16>,
    %c0_5 = arith.constant 0 : index
    %c0_6 = arith.constant 0 : index
    %5 = vector.load %arg3[%c0_5, %c0_6] : memref<16x1xf32, #tpu.memory_space<vmem>>, vector<16x1xf32>
    %cst_7 = arith.constant dense<0.000000e+00> : vector<8x1xf32>
    %6 = tpu.matmul %2, %5, %cst_7 {dimension_numbers = #tpu.dot_dimension_numbers<[1], [0], [0], [1], [0, 0, 1, 1], [], []>} : vector<8x16xf32>, vector<16x1xf32>, vector<8x1xf32> -> vector<8x1xf32>
    %c0_8 = arith.constant 0 : index
    %c0_9 = arith.constant 0 : index
    %7 = vector.load %arg6[%c0_8, %c0_9] : memref<8x1xf32, #tpu.memory_space<vmem>>, vector<8x1xf32>
    tpu.vector_store %arg6[%c0_8, %c0_9], %6 {strides = array<i32>} : memref<8x1xf32, #tpu.memory_space<vmem>>, vector<8x1xf32>,
    %c0_10 = arith.constant 0 : index
    %c0_11 = arith.constant 0 : index
    %8 = vector.load %arg4[%c0_10, %c0_11] : memref<1x16xf32, #tpu.memory_space<vmem>>, vector<1x16xf32>
    %cst_12 = arith.constant dense<0.000000e+00> : vector<1x8xf32>
    %9 = tpu.matmul %8, %2, %cst_12 {dimension_numbers = #tpu.dot_dimension_numbers<[1], [1], [0], [0], [0, 0, 1, 0], [], []>} : vector<1x16xf32>, vector<8x16xf32>, vector<1x8xf32> -> vector<1x8xf32>
    %c0_13 = arith.constant 0 : index
    %c0_14 = arith.constant 0 : index
    %10 = vector.load %arg7[%c0_13, %c0_14] : memref<1x8xf32, #tpu.memory_space<vmem>>, vector<1x8xf32>
    tpu.vector_store %arg7[%c0_13, %c0_14], %9 {strides = array<i32>} : memref<1x8xf32, #tpu.memory_space<vmem>>, vector<1x8xf32>,
    return
  }
  func.func @transform_0(%arg0: i32) -> (i32, i32) {
    %c0_i32 = arith.constant 0 : i32
    %c0_i32_0 = arith.constant 0 : i32
    return %arg0, %c0_i32 : i32, i32
  }
  func.func @transform_1(%arg0: i32) -> (i32, i32) {
    %c0_i32 = arith.constant 0 : i32
    %c0_i32_0 = arith.constant 0 : i32
    %c0_i32_1 = arith.constant 0 : i32
    return %c0_i32, %c0_i32_0 : i32, i32
  }
  func.func @transform_2(%arg0: i32) -> (i32, i32) {
    %c0_i32 = arith.constant 0 : i32
    %c0_i32_0 = arith.constant 0 : i32
    %c0_i32_1 = arith.constant 0 : i32
    return %c0_i32, %c0_i32_0 : i32, i32
  }
  func.func @transform_3(%arg0: i32) -> (i32, i32) {
    %c0_i32 = arith.constant 0 : i32
    %c0_i32_0 = arith.constant 0 : i32
    %c0_i32_1 = arith.constant 0 : i32
    return %c0_i32, %c0_i32_0 : i32, i32
  }
  func.func @transform_4(%arg0: i32) -> (i32, i32) {
    %c0_i32 = arith.constant 0 : i32
    %c0_i32_0 = arith.constant 0 : i32
    return %arg0, %c0_i32 : i32, i32
  }
  func.func @transform_5(%arg0: i32) -> (i32, i32) {
    %c0_i32 = arith.constant 0 : i32
    %c0_i32_0 = arith.constant 0 : i32
    return %arg0, %c0_i32 : i32, i32
  }
  func.func @transform_6(%arg0: i32) -> (i32, i32) {
    %c0_i32 = arith.constant 0 : i32
    %c0_i32_0 = arith.constant 0 : i32
    return %c0_i32, %arg0 : i32, i32
  }
}

</mosaic_0001>

<bundles_post_ra>
// kernel: tpu_custom_call.1
= control target key start
LH: loop header
LB: loop body
LE: loop exit
PB: predicated region body
PF: predicated region fallthrough
CT: control target
= control target key end

     0   :  { %12 = vsyncpa [#allocation3], 0  ;;  %v375_v1 = vmov 0.0   ;;  %vm376_vm0 = vmmov 0   ;;  %s450_s0 = inlined_call_operand.vmem [shape: f32[8,32], index: 0, kind: input, shape index: {}]   ;;  %s451_s1 = inlined_call_operand.vmem [shape: f32[32,16], index: 1, kind: input, shape index: {}]   ;;  %s452_s2 = inlined_call_operand.vmem [shape: f32[16,1], index: 2, kind: input, shape index: {}]   ;;  %s453_s3 = inlined_call_operand.vmem [shape: f32[1,16], index: 3, kind: input, shape index: {}]   ;;  %s454_s4 = inlined_call_operand.hbm [shape: bf16[8,16], index: 4, kind: output, shape index: {0}]   ;;  %s455_s5 = inlined_call_operand.vmem [shape: f32[8,1], index: 5, kind: output, shape index: {1}]   ;;  %s456_s6 = inlined_call_operand.hbm [shape: f32[1,8], index: 6, kind: output, shape index: {2}]  }
   0x1   :  { %v26_v0 = vld [vmem:[%s451_s1 + $0x18] sm:$0xff]  ;;  %304 = vmatprep.subr.mxu0 %v375_v1  ;;  %v25_v2 = vld [vmem:[%s451_s1 + $0x10] sm:$0xff]  ;;  %312 = vmatprep.mubr.msk.f32.mxu0 %vm376_vm0, %v375_v1  ;;  %v105_v3 = vld [vmem:[%s452_s2 + $0x8] sm:$0xff] }
   0x2   :  { %305 = vmatpush3.msra.mxu0 %v26_v0  ;;  %315 = vmatprep.subr.mxu1 %v375_v1  ;;  %v104_v4 = vld [vmem:[%s452_s2] sm:$0xff] }
   0x3   :  { %13 = vsyncpa [#allocation5], 0  ;;  %306 = vmatprep.subr.mxu0 %v375_v1  ;;  %v24_v5 = vld [vmem:[%s451_s1 + $0x8] sm:$0xff]  ;;  %316 = vmatpush3.msra.mxu1 %v105_v3  ;;  %v23_v6 = vld [vmem:[%s451_s1] sm:$0xff]  ;;  %vm27_vm1 = vcmask 261120   ;;  %vm106_vm2 = vcmask 130048  }
   0x4   :  { %307 = vmatpush3.msra.mxu0 %v25_v2  ;;  %317 = vmatprep.subr.mxu1 %v375_v1  ;;  %v22_v7 = vld [vmem:[%s450_s0] sm:$0xff]  ;;  %vm102_vm3 = vcmask 125952   ;;  %s377_s0 = smov [#allocation2]  }
   0x5   :  { %308 = vmatprep.subr.mxu0 %v375_v1  ;;  %318 = vmatpush3.msra.mxu1 %v104_v4  ;;  %v182_v11 = vld [vmem:[%s453_s3] sm:$0x1]  ;;  %s264_s11 = sshll.u32 %s377_s0, 4  ;;  %s265_s11 = int_to_ptr.vmem [resolvable:$true] %s264_s11 }
   0x6   :  { %309 = vmatpush3.msra.mxu0 %v24_v5  ;;  %319 = vmatprep.mubr.msk.f32.mxu1 %vm376_vm0, %v375_v1  ;;  %s331_s12 = scalar_lea.vmem %s265_s11, 64  ;;  %p336_p1 = scmp.lt.s32.totalorder %s265_s11, %s265_s11 }
   0x7   :  { %310 = vmatprep.subr.mxu0 %v375_v1  ;;  %322 = vmatprep.subr.mxu1 %v375_v1  ;;  %p332_p0 = scmp.ne.s32.totalorder %s265_s11, %s331_s12  ;;  %p337_p2 = scmp.lt.s32.totalorder %s331_s12, %s331_s12 }
   0x8   :  { %311 = vmatpush3.msra.mxu0 %v23_v6 }
   0x9   :  { %313 = vmatmul.mubr.msk.f32.vlgmr.msra.gmra.mxu0 %vm27_vm1, %v22_v7  ;;  %p338_p3 = por %p337_p2, %p336_p1 }
   0xb   :  { %p339_p4 = pnand %p338_p3, %p332_p0 }
  0xc9   :  { %v97_v8 = vpop.f32.mrf.mxu0 }
  0xca   :  { %320 = vmatmul.mubr.msk.f32.vlgmr.msra.gmra.mxu1 %vm106_vm2, %v97_v8  ;;  %v101_v9 = vpack.c.bf16 %v97_v8, %v97_v8 }
  0xcb   :  { %323 = vmatpush3.xpose.msk.msra.mxu1 %vm106_vm2, %v97_v8  ;;  %v314_v10 = vpop.f32.mrf.mxu0  ;;  %324 = vmatprep.mubr.msk.f32.mxu1 %vm376_vm0, %v375_v1 }
  0xcc   :  { %103 = vst.msk [vmem:[#allocation2] sm:$0xf] %vm102_vm3, %v101_v9 }
  0xce   :  { %325 = vmatmul.mubr.msk.f32.vlgmr.msra.gmra.mxu1 %vm106_vm2, %v182_v11 }
  0xcf   :  { %342 = shalt.err (!%p339_p4)
}
  0xd0   :  { %267 = dma.vmem_to_hbm [thread:$0]  %s265_s11, 64, %s454_s4, [#allocation3]   ;;  %vm180_vm4 = vcmask 7168   ;;  %vm256_vm5 = vcmask 57344  }
  0xd1   :  { %s378_s15 = smov [#allocation4]  }
  0xd2   :  { %s276_s3 = sshll.u32 %s378_s15, 4  ;;  %s277_s3 = int_to_ptr.vmem [resolvable:$true] %s276_s3 }
  0xd3   :  { %s351_s18 = scalar_lea.vmem %s277_s3, 16  ;;  %s355_s19 = scalar_lea.vmem %s277_s3, 32 }
  0xd4   :  { %p352_p5 = scmp.ne.s32.totalorder %s277_s3, %s351_s18  ;;  %p356_p6 = scmp.lt.s32.totalorder %s277_s3, %s277_s3 }
  0xd5   :  { %p357_p7 = scmp.lt.s32.totalorder %s355_s19, %s351_s18 }
  0xd7   :  { %p358_p8 = por %p357_p7, %p356_p6 }
  0xd9   :  { %p359_p9 = pnand %p358_p8, %p352_p5 }
 0x18a   :  { %v176_v12 = vpop.f32.mrf.mxu1 }
 0x18b   :  { %181 = vst.msk [vmem:[%s455_s5] sm:$0xff] %vm180_vm4, %v176_v12 }
 0x18c   :  { %v321_v13 = vpop.f32.mrf.mxu1 }
 0x18e   :  { %v252_v14 = vpop.f32.mrf.mxu1 }
 0x18f   :  { %257 = vst.msk [vmem:[#allocation4] sm:$0x1] %vm256_vm5, %v252_v14 }
 0x190   :  { %v326_v15 = vpop.f32.mrf.mxu1 }
 0x191   :  { %362 = shalt.err (!%p359_p9)
}
 0x192   :  { %279 = dma.vmem_to_hbm [thread:$0]  %s277_s3, 16, %s456_s6, [#allocation5]  }
 0x193   :  { %371 = dma.done.wait [#allocation3], 64  }
 0x194   :  { %372 = vsyncadd [#allocation3], 4294967232 }
 0x195   :  { %373 = dma.done.wait [#allocation5], 16  }
 0x196   :  { %374 = vsyncadd [#allocation5], 4294967280 }
 0x197   :  { %288 = vsyncpa [#allocation3], 1 }
 0x198   :  { %289 = vsyncpa [#allocation5], 1 }

</bundles_post_ra>
